<compile_context>
chip_gen: v5e
topology: v5e:2x2
jax: 0.10.0
libtpu: 0.0.40
codegen_flags: <defaults>
</compile_context>

<pallas_src>
import functools

import jax
import jax.numpy as jnp
from jax.experimental import pallas as pl
from jax.experimental.pallas import tpu as pltpu


_LANE = 128
_SMALL_INPUT_BYTES = 1 << 20      # below this, a fused XLA reduction beats any launch


def _sublane_pack(dtype):
    # rows per packed 32-bit sublane: f32 -> 8, bf16/f16 -> 16, int8/fp8 -> 32
    itemsize = jnp.dtype(dtype).itemsize
    return max(8, 8 * (4 // itemsize))


@functools.lru_cache(maxsize=None)
def _hw_params():
    """(num_tensorcores, vmem_limit_bytes) — queried defensively, safe defaults."""
    num_tc = 1
    phys_vmem = 64 * 1024 * 1024            # conservative (v7x); v5e/v6e have 128 MiB
    try:
        info = pltpu.get_tpu_info()
        for attr in ("vmem_capacity_bytes", "vmem_bytes", "vmem_size_bytes"):
            v = getattr(info, attr, None)
            if v:
                phys_vmem = int(v)
                break
        for attr in ("num_cores", "tensorcores_per_chip", "tensor_cores_per_chip",
                     "num_tensorcores", "core_count"):
            v = getattr(info, attr, None)
            if v:
                num_tc = int(v)
                break
    except Exception:
        pass
    # 48 MiB on 64 MiB-VMEM parts (v7x), 64 MiB on 128 MiB parts (v5e/v6e).
    vmem_limit = min(64 * 1024 * 1024, (phys_vmem * 3) // 4)
    return num_tc, vmem_limit


def _plan_tiles(B, S, D, pack, num_tc, max_tile_elems):
    """Pick (tb, ts, td) block dims for the (B, S, D) -> (B, D) reduction."""

    def fits(tb_, td_):
        return tb_ * pack * td_ <= max_tile_elems

    # Batch split across TensorCores (megacore) only when the resulting 2-D
    # output block keeps x8 sublane alignment (tb a multiple of 8).
    tb = B // num_tc if (num_tc >= 2 and B % (8 * num_tc) == 0) else B

    # Feature tile: prefer td == D so every DMA row is one contiguous run.
    td = D
    if (num_tc >= 2 and tb == B and D % (num_tc * _LANE) == 0
            and D // num_tc >= 4 * _LANE and fits(tb, D // num_tc)):
        td = D // num_tc            # feature-slab split only when B could not be split
    if not fits(tb, td) and D > _LANE:
        # Must split D for VMEM: largest 128-multiple tile that fits.  A ragged
        # last D tile is fine: OOB lanes never leak into valid output columns.
        cap = max(_LANE, (max_tile_elems // (tb * pack)) // _LANE * _LANE)
        td = min(cap, (D // _LANE) * _LANE)
    if not fits(tb, td) and B > 8:
        # Still too big (huge batch): shrink the batch tile to an x8 multiple.
        cap = max(8, (max_tile_elems // (pack * td)) // 8 * 8)
        tb = min(tb, cap)

    # Reduction tile: as many S rows as fit, rounded to the sublane pack.
    max_ts = max(1, max_tile_elems // (tb * td))
    if max_ts >= S:
        ts = S
    else:
        ts = max(pack, (max_ts // pack) * pack)
        # Prefer a nearby divisor of S so the ragged-S mask disappears entirely.
        for cand in range(ts, max(pack, ts - 4 * pack) - 1, -pack):
            if S % cand == 0:
                ts = cand
                break
    return tb, ts, td


def _pool_kernel(x_ref, o_ref, acc_ref, *, method, inv_s, s_total, ts, needs_mask):
    k = pl.program_id(2)                     # reduction axis, kept last in the grid
    last = pl.num_programs(2) - 1

    if method == "mean":
        neutral = 0.0
    elif method == "max":
        neutral = -jnp.inf
    else:  # min
        neutral = jnp.inf

    @pl.when(k == 0)
    def _init():
        acc_ref[...] = jnp.full(acc_ref.shape, neutral, dtype=acc_ref.dtype)

    def _accumulate(x):
        # x: (tb, ts, td) in f32; reduce over the S (sublane) axis.
        if method == "mean":
            acc_ref[...] = acc_ref[...] + jnp.sum(x, axis=1)
        elif method == "max":
            acc_ref[...] = jnp.maximum(acc_ref[...], jnp.max(x, axis=1))
        else:  # min
            acc_ref[...] = jnp.minimum(acc_ref[...], jnp.min(x, axis=1))

    if needs_mask:
        # Ragged S: only the final tile hangs past the array end; mask only
        # there and keep every other step on the cheap unmasked path.
        @pl.when(k != last)
        def _full_tile():
            _accumulate(x_ref[...].astype(jnp.float32))

        @pl.when(k == last)
        def _ragged_tile():
            x = x_ref[...].astype(jnp.float32)
            row = k * ts + jax.lax.broadcasted_iota(jnp.int32, x.shape, 1)
            _accumulate(jnp.where(row < s_total, x, neutral))
    else:
        _accumulate(x_ref[...].astype(jnp.float32))

    @pl.when(k == last)
    def _finalize():
        res = acc_ref[...]
        if method == "mean":
            res = res * inv_s
        o_ref[...] = res.astype(o_ref.dtype)


def _jnp_pool(x, method):
    if method == "mean":
        return jnp.mean(x, axis=1)
    if method == "max":
        return jnp.max(x, axis=1)
    return jnp.min(x, axis=1)


def pool_dim1(x, method="mean", *, min_pallas_bytes=_SMALL_INPUT_BYTES, max_tile_elems=None):
    """Reduce a (B, S, D) tensor over dim=1 with 'mean' | 'max' | 'min'."""
    assert x.ndim == 3, "PoolSampler expects (batch, seq, feature) tensors"
    B, S, D = x.shape
    itemsize = jnp.dtype(x.dtype).itemsize

    # Fallbacks: tiny inputs (launch overhead dominates), empty reduction axis,
    # and non-floating dtypes use the fused XLA reduction instead.
    if (S == 0 or not jnp.issubdtype(x.dtype, jnp.floating)
            or x.size * itemsize < min_pallas_bytes):
        return _jnp_pool(x, method)

    num_tc, vmem_limit = _hw_params()
    pack = _sublane_pack(x.dtype)
    if max_tile_elems is None:
        # Budget: double-buffered input tile + the in-kernel f32 upcast temp.
        max_tile_elems = int(vmem_limit * 0.65) // (2 * itemsize + 4)

    tb, ts, td = _plan_tiles(B, S, D, pack, num_tc, max_tile_elems)
    grid = (pl.cdiv(B, tb), pl.cdiv(D, td), pl.cdiv(S, ts))
    needs_mask = (S % ts) != 0

    kernel = functools.partial(
        _pool_kernel, method=method, inv_s=1.0 / S, s_total=S, ts=ts,
        needs_mask=needs_mask)

    return pl.pallas_call(
        kernel,
        out_shape=jax.ShapeDtypeStruct((B, D), x.dtype),
        grid=grid,
        in_specs=[pl.BlockSpec((tb, ts, td), lambda b, j, k: (b, k, j))],
        out_specs=pl.BlockSpec((tb, td), lambda b, j, k: (b, j)),
        scratch_shapes=[pltpu.VMEM((tb, td), jnp.float32)],
        compiler_params=pltpu.CompilerParams(
            # batch/feature tiles are independent (megacore-parallel); the S
            # axis is the output-resident reduction, kept last.
            dimension_semantics=("parallel", "parallel", "arbitrary"),
            vmem_limit_bytes=vmem_limit,
        ),
    )(x)


class PoolSampler:
    """JAX/Pallas port of the PyTorch PoolSampler module (no parameters)."""

    def __init__(self, pool_method="mean"):
        if pool_method not in ("mean", "max", "min"):
            raise NotImplementedError(pool_method)
        self.name = f"pool{pool_method}"
        self.pool_method = pool_method
        # TODO(synk): torch.max/min with dim= also return argmax/argmin indices;
        # only the pooled values are produced here.

    def __call__(self, *tensors):
        # Mirrors `forward`: pools each tensor over dim=1; returns a generator.
        return (pool_dim1(t, self.pool_method) for t in tensors)


if __name__ == "__main__":
    key = jax.random.PRNGKey(0)
    k1, k2, k3, k4, k5 = jax.random.split(key, 5)

    # Small shapes consistent with the module: (batch, seq, hidden)
    x1 = jax.random.normal(k1, (2, 16, 32), dtype=jnp.float32)
    x2 = jax.random.normal(k2, (2, 8, 32), dtype=jnp.float32)

    # Module-level path (small inputs route to the fused-XLA fallback).
    sampler = PoolSampler("mean")
    out1, out2 = tuple(sampler(x1, x2))
    out1 = jax.block_until_ready(out1)
    out2 = jax.block_until_ready(out2)
    assert out1.shape == (2, 32) and out2.shape == (2, 32)
    assert jnp.allclose(out1, jnp.mean(x1, axis=1), atol=1e-5), "mean-pool mismatch (x1)"
    assert jnp.allclose(out2, jnp.mean(x2, axis=1), atol=1e-5), "mean-pool mismatch (x2)"

    # Force the Pallas path on the same small shapes (single S step, td == D,
    # D not a multiple of 128 -> no host-side pad, block == full dim).
    for method, ref in (("mean", jnp.mean(x1, axis=1)),
                        ("max", jnp.max(x1, axis=1)),
                        ("min", jnp.min(x1, axis=1))):
        got = jax.block_until_ready(pool_dim1(x1, method, min_pallas_bytes=0))
        assert jnp.allclose(got, ref, atol=1e-5), f"{method}-pool kernel mismatch"

    # Multi-step reduction with a ragged last S tile (mask only on last step).
    x3 = jax.random.normal(k3, (2, 50, 256), dtype=jnp.float32)
    small = 2 * 16 * 256            # -> ts=16, 4 S steps, last one masked
    m3 = jax.block_until_ready(pool_dim1(x3, "mean", min_pallas_bytes=0, max_tile_elems=small))
    mx3 = jax.block_until_ready(pool_dim1(x3, "max", min_pallas_bytes=0, max_tile_elems=small))
    mn3 = jax.block_until_ready(pool_dim1(x3, "min", min_pallas_bytes=0, max_tile_elems=small))
    assert jnp.allclose(m3, jnp.mean(x3, axis=1), atol=1e-5), "tiled mean mismatch"
    assert jnp.allclose(mx3, jnp.max(x3, axis=1)), "tiled max mismatch"
    assert jnp.allclose(mn3, jnp.min(x3, axis=1)), "tiled min mismatch"

    # Ragged-D feature split (128-lane tiles with a partial last D tile, no pad).
    x5 = jax.random.normal(k5, (2, 24, 200), dtype=jnp.float32)
    tiny = 2 * 8 * 128              # forces td=128 -> 2 D tiles, last one ragged
    m5 = jax.block_until_ready(pool_dim1(x5, "mean", min_pallas_bytes=0, max_tile_elems=tiny))
    assert jnp.allclose(m5, jnp.mean(x5, axis=1), atol=1e-5), "ragged-D mean mismatch"

    # bf16 input: accumulation happens in f32, cast once at finalize.
    x4 = jax.random.normal(k4, (2, 16, 32), dtype=jnp.bfloat16)
    m4 = jax.block_until_ready(pool_dim1(x4, "mean", min_pallas_bytes=0))
    ref4 = jnp.mean(x4.astype(jnp.float32), axis=1)
    assert jnp.allclose(m4.astype(jnp.float32), ref4, atol=2e-2), "bf16 mean mismatch"

    print("KERNEL_OK")
</pallas_src>

<mosaic_0001>
module attributes {stable_mosaic.version = 11 : i64} {
  func.func @_pool_kernel(%arg0: i32, %arg1: i32, %arg2: i32, %arg3: memref<2x16x32xf32, #tpu.memory_space<vmem>>, %arg4: memref<2x32xf32, #tpu.memory_space<vmem>>, %arg5: memref<2x32xf32, #tpu.memory_space<vmem>>) attributes {dimension_semantics = [#tpu.dimension_semantics<parallel>, #tpu.dimension_semantics<parallel>, #tpu.dimension_semantics<arbitrary>], iteration_bounds = array<i64: 1, 1, 1>, scalar_prefetch = 0 : i64, scratch_operands = 1 : i64, tpu.core_type = #tpu.core_type<tc>, window_params = [{transform_indices = @transform_0, window_bounds = array<i64: 2, 16, 32>}, {transform_indices = @transform_1, window_bounds = array<i64: 2, 32>}]} {
    %c0_i32 = arith.constant 0 : i32
    %0 = arith.cmpi eq, %arg2, %c0_i32 : i32
    %1 = arith.extui %0 : i1 to i32
    %c0_i32_0 = arith.constant 0 : i32
    %2 = arith.cmpi ne, %1, %c0_i32_0 : i32
    scf.if %2 {
      %cst_9 = arith.constant 0.000000e+00 : f32
      %11 = vector.broadcast %cst_9 : f32 to vector<2x32xf32>
      %c0_10 = arith.constant 0 : index
      %c0_11 = arith.constant 0 : index
      %12 = vector.load %arg5[%c0_10, %c0_11] : memref<2x32xf32, #tpu.memory_space<vmem>>, vector<2x32xf32>
      tpu.vector_store %arg5[%c0_10, %c0_11], %11 {strides = array<i32>} : memref<2x32xf32, #tpu.memory_space<vmem>>, vector<2x32xf32>,
    } else {
    }
    %c0 = arith.constant 0 : index
    %c0_1 = arith.constant 0 : index
    %c0_2 = arith.constant 0 : index
    %3 = vector.load %arg3[%c0, %c0_1, %c0_2] : memref<2x16x32xf32, #tpu.memory_space<vmem>>, vector<2x16x32xf32>
    %c0_3 = arith.constant 0 : index
    %c0_4 = arith.constant 0 : index
    %4 = vector.load %arg5[%c0_3, %c0_4] : memref<2x32xf32, #tpu.memory_space<vmem>>, vector<2x32xf32>
    %cst = arith.constant dense<0.000000e+00> : vector<2x32xf32>
    %5 = vector.multi_reduction <add>, %3, %cst [1] : vector<2x16x32xf32> to vector<2x32xf32>
    %6 = arith.addf %4, %5 : vector<2x32xf32>
    %c0_5 = arith.constant 0 : index
    %c0_6 = arith.constant 0 : index
    %7 = vector.load %arg5[%c0_5, %c0_6] : memref<2x32xf32, #tpu.memory_space<vmem>>, vector<2x32xf32>
    tpu.vector_store %arg5[%c0_5, %c0_6], %6 {strides = array<i32>} : memref<2x32xf32, #tpu.memory_space<vmem>>, vector<2x32xf32>,
    %c0_i32_7 = arith.constant 0 : i32
    %8 = arith.cmpi eq, %arg2, %c0_i32_7 : i32
    %9 = arith.extui %8 : i1 to i32
    %c0_i32_8 = arith.constant 0 : i32
    %10 = arith.cmpi ne, %9, %c0_i32_8 : i32
    scf.if %10 {
      %c0_9 = arith.constant 0 : index
      %c0_10 = arith.constant 0 : index
      %11 = vector.load %arg5[%c0_9, %c0_10] : memref<2x32xf32, #tpu.memory_space<vmem>>, vector<2x32xf32>
      %cst_11 = arith.constant 6.250000e-02 : f32
      %12 = vector.broadcast %cst_11 : f32 to vector<2x32xf32>
      %13 = arith.mulf %11, %12 : vector<2x32xf32>
      %c0_12 = arith.constant 0 : index
      %c0_13 = arith.constant 0 : index
      %14 = vector.load %arg4[%c0_12, %c0_13] : memref<2x32xf32, #tpu.memory_space<vmem>>, vector<2x32xf32>
      tpu.vector_store %arg4[%c0_12, %c0_13], %13 {strides = array<i32>} : memref<2x32xf32, #tpu.memory_space<vmem>>, vector<2x32xf32>,
    } else {
    }
    return
  }
  func.func @transform_0(%arg0: i32, %arg1: i32, %arg2: i32) -> (i32, i32, i32) {
    %c0_i32 = arith.constant 0 : i32
    return %arg0, %arg2, %arg1 : i32, i32, i32
  }
  func.func @transform_1(%arg0: i32, %arg1: i32, %arg2: i32) -> (i32, i32) {
    %c0_i32 = arith.constant 0 : i32
    return %arg0, %arg1 : i32, i32
  }
}

</mosaic_0001>

<bundles_post_ra>
// kernel: tpu_custom_call.1
= control target key start
LH: loop header
LB: loop body
LE: loop exit
PB: predicated region body
PF: predicated region fallthrough
CT: control target
= control target key end

     0   :  { %6 = vsyncpa [#allocation4], 0  ;;  %s167_s0 = inlined_call_operand.hbm [shape: f32[2,16,32], index: 0, kind: input, shape index: {}]   ;;  %s168_s1 = inlined_call_operand.hbm [shape: f32[2,32], index: 1, kind: output, shape index: {}]  }
   0x1   :  { %7 = vsyncpa [#allocation5], 0  ;;  %s12_s8 = sshll.u32 %s167_s0, 4  ;;  %s143_s9 = smov [#allocation3]   ;;  %s13_s8 = int_to_ptr.hbm [resolvable:$true] %s12_s8 }
   0x2   :  { %s14_s10 = sshll.u32 %s143_s9, 4  ;;  %s144_s11 = smov 128   ;;  %s15_s10 = int_to_ptr.vmem [resolvable:$true] %s14_s10 }
   0x3   :  { %s145_s12 = smov 8  }
   0x4   :  { %20 = dma.hbm_to_vmem [thread:$0]  %s13_s8, 512, %s15_s10, [#allocation4], %s144_s11, %s144_s11, %s145_s12  }
   0x5   :  { %139 = dma.done.wait [#allocation4], 512  }
   0x6   :  { %140 = vsyncadd [#allocation4], 4294966784  ;;  %vm29_vm0 = vcmask 254976   ;;  %v146_v0 = vmov 0.0   ;;  %vm36_vm1 = vcmask 261120   ;;  %v31_v1 = vld [vmem:[#allocation3] sm:$0xff] }
   0x7   :  { %30 = vst.msk [vmem:[#allocation2] sm:$0x3] %vm29_vm0, %v146_v0  ;;  %v32_v2 = vld [vmem:[#allocation3 + $0x8] sm:$0xff]  ;;  %v33_v3 = vld [vmem:[#allocation3 + $0x10] sm:$0xff]  ;;  %v34_v4 = vld [vmem:[#allocation3 + $0x18] sm:$0xff]  ;;  %v37_v5 = vsel %vm36_vm1, %v31_v1, 0.0 }
   0x8   :  { %v38_v6 = vsel %vm36_vm1, %v32_v2, 0.0  ;;  %v46_v7 = vsel %vm36_vm1, %v33_v3, 0.0  ;;  %v47_v9 = vsel %vm36_vm1, %v34_v4, 0.0  ;;  %vm57_vm2 = vcmask 1041409   ;;  %s147_s0 = smov [#allocation6]   ;;  %s76_s16 = sshll.u32 %s168_s1, 4  ;;  %s77_s16 = int_to_ptr.hbm [resolvable:$true] %s76_s16 }
   0x9   :  { %v39_v8 = vadd.f32 %v38_v6, %v37_v5  ;;  %v48_v10 = vadd.f32 %v47_v9, %v46_v7  ;;  %s74_s13 = sshll.u32 %s147_s0, 4  ;;  %s75_s13 = int_to_ptr.vmem [resolvable:$true] %s74_s13 }
   0xb   :  { %v40_v11 = vrot.slane %v39_v8, 4  ;;  %v49_v12 = vrot.slane %v48_v10, 4 }
   0xd   :  { %v41_v13 = vadd.f32 %v40_v11, %v39_v8  ;;  %v50_v14 = vadd.f32 %v49_v12, %v48_v10 }
   0xe   :  { %v35_v22 = vld [vmem:[#allocation2] sm:$0x3] }
   0xf   :  { %v42_v15 = vrot.slane %v41_v13, 2  ;;  %v51_v16 = vrot.slane %v50_v14, 2 }
  0x11   :  { %v43_v17 = vadd.f32 %v42_v15, %v41_v13  ;;  %v52_v18 = vadd.f32 %v51_v16, %v50_v14 }
  0x13   :  { %v44_v19 = vrot.slane %v43_v17, 1  ;;  %v53_v20 = vrot.slane %v52_v18, 1 }
  0x15   :  { %v45_v21 = vadd.f32 %v44_v19, %v43_v17  ;;  %v54_v23 = vadd.f32 %v53_v20, %v52_v18 }
  0x17   :  { %v58_v24 = vsel %vm57_vm2, %v54_v23, %v45_v21 }
  0x18   :  { %v60_v25 = vadd.f32 %v58_v24, %v35_v22 }
  0x1a   :  { %62 = vst.msk [vmem:[#allocation2] sm:$0x3] %vm29_vm0, %v60_v25 }
  0x21   :  { %v66_v26 = vld [vmem:[#allocation2] sm:$0x3] }
  0x22   :  { %v67_v27 = vmul.f32 0.0625, %v66_v26 }
  0x24   :  { %68 = vst.msk [vmem:[#allocation6] sm:$0x3] %vm29_vm0, %v67_v27 }
  0x25   :  { %79 = dma.vmem_to_hbm [thread:$0]  %s75_s13, 32, %s77_s16, [#allocation5]  }
  0x26   :  { %141 = dma.done.wait [#allocation5], 32  }
  0x27   :  { %142 = vsyncadd [#allocation5], 4294967264 }
  0x28   :  { %84 = vsyncpa [#allocation4], 1 }
  0x29   :  { %85 = vsyncpa [#allocation5], 1 }

</bundles_post_ra>
